<compile_context>
chip_gen: v7x
topology: tpu7x:2x2x1
jax: 0.10.0
libtpu: 0.0.40
codegen_flags: <defaults>
</compile_context>

<pallas_src>
import functools

import jax
import jax.numpy as jnp
from jax.experimental import pallas as pl
from jax.experimental.pallas import tpu as pltpu

_LANE = 128
_SUBLANE = 8
_MAX_K_TILE = 512  # src/K DMA tile target (>=512 reaches ~85% of HBM roofline per measurements)


def _round_up(n, m):
    return (n + m - 1) // m * m


def _sage_fused_kernel(xd_ref, x_ref, a0_ref, a1_ref, a2_ref,
                       w0_ref, w1_ref, w2_ref, e0_ref, e1_ref, e2_ref,
                       o_ref, acc0_ref, *, dst_pad1, dst_pad2):
    """Grid axis 0 = layer-0 src/K tiles. Layers 1-2 run at the last K step."""
    k = pl.program_id(0)

    @pl.when(k == 0)
    def _init():
        acc0_ref[...] = jnp.zeros_like(acc0_ref)

    # Layer-0 mean aggregation A0 @ x, streamed over src/K tiles, f32 accumulation.
    acc0_ref[...] += jnp.dot(a0_ref[...], x_ref[...],
                             preferred_element_type=jnp.float32)

    @pl.when(k == pl.num_programs(0) - 1)
    def _finalize():
        def combine(h_dst, agg, w_ref, e_ref, relu):
            # Two K=F matmuls accumulated in f32; agg is cast to bf16 exactly once and
            # stays out of any bf16 VMEM round-trip (less rounding, no extra store slot).
            z = jnp.dot(h_dst, w_ref[0], preferred_element_type=jnp.float32)
            z = z + jnp.dot(agg.astype(jnp.bfloat16), w_ref[1],
                            preferred_element_type=jnp.float32)
            # Epilogue (f32): conv bias + eval-mode BatchNorm folded into one affine.
            z = z * e_ref[0:1, :] + e_ref[1:2, :]
            if relu:
                z = jnp.maximum(z, 0.0)  # ReLU; Dropout(0.5) is identity in eval mode
            return z

        # ---- layer 0 ----
        h1 = combine(xd_ref[...], acc0_ref[...], w0_ref, e0_ref, True
                     ).astype(jnp.bfloat16)                                  # (dst_pad0, H)
        # ---- layer 1 ----
        agg1 = jnp.dot(a1_ref[...], h1, preferred_element_type=jnp.float32)  # (dst_pad1, H)
        h2 = combine(h1[:dst_pad1, :], agg1, w1_ref, e1_ref, True
                     ).astype(jnp.bfloat16)                                  # (dst_pad1, H)
        # ---- layer 2 ----
        agg2 = jnp.dot(a2_ref[...], h2, preferred_element_type=jnp.float32)  # (dst_pad2, H)
        z = combine(h2[:dst_pad2, :], agg2, w2_ref, e2_ref, False)           # (dst_pad2, O)
        o_ref[...] = z.astype(o_ref.dtype)


def pack_params(params):
    """One-time weight packing (padding, bf16 cast, bias folded into eval-BN affine).

    Hoisted out of the per-forward path: sage_forward only pads x and the adjacencies.
    """
    n_layers = len(params["w_self"])
    w_packed, ep_packed = [], []
    for l in range(n_layers):
        w_self, w_neigh, bias = params["w_self"][l], params["w_neigh"][l], params["bias"][l]
        fi, fo = w_self.shape
        fi_p, fo_p = _round_up(fi, _LANE), _round_up(fo, _LANE)
        w = jnp.zeros((2, fi_p, fo_p), jnp.float32)
        w = w.at[0, :fi, :fo].set(w_self).at[1, :fi, :fo].set(w_neigh)
        if l != n_layers - 1:
            scale = params["bn_scale"][l]
            shift = bias * scale + params["bn_shift"][l]  # fold conv bias into BN affine
        else:
            scale = jnp.ones((fo,), jnp.float32)
            shift = bias
        ep = jnp.zeros((2, fo_p), jnp.float32)
        ep = ep.at[0, :fo].set(scale).at[1, :fo].set(shift)
        w_packed.append(w.astype(jnp.bfloat16))
        ep_packed.append(ep)
    return {"w": w_packed, "ep": ep_packed}


def sage_forward(adjs, x, packed, *, out_size):
    """3-layer SAGE forward (eval mode) as one fused Pallas kernel."""
    w0, w1, w2 = packed["w"]
    e0, e1, e2 = packed["ep"]
    f_in0 = w0.shape[1]    # padded input feature width
    f_hid = w0.shape[2]    # padded hidden width
    f_out2 = w2.shape[2]   # padded output width

    n_src0 = x.shape[0]
    n_dst = [a.shape[0] for a in adjs]

    # Per-layer padded node counts (sublane aligned). src of layer l+1 == dst of layer l.
    dst_pad0 = _round_up(n_dst[0], _SUBLANE)
    dst_pad1 = _round_up(n_dst[1], _SUBLANE)
    dst_pad2 = _round_up(n_dst[2], _SUBLANE)

    # Layer-0 src axis: K-tiled / streamed.
    src_pad0 = _round_up(n_src0, _SUBLANE)
    tk = _MAX_K_TILE if src_pad0 >= _MAX_K_TILE else src_pad0
    src_pad0 = _round_up(src_pad0, tk)
    num_k = src_pad0 // tk

    # ---- per-call padding (only x and the adjacencies) ----
    x_pad = jnp.zeros((src_pad0, f_in0), jnp.float32
                      ).at[:n_src0, :x.shape[1]].set(x).astype(jnp.bfloat16)
    x_dst = x_pad[:dst_pad0]  # dst prefix for the layer-0 self term (small, stays resident)
    a0 = jnp.zeros((dst_pad0, src_pad0), jnp.float32
                   ).at[:adjs[0].shape[0], :adjs[0].shape[1]].set(adjs[0]).astype(jnp.bfloat16)
    a1 = jnp.zeros((dst_pad1, dst_pad0), jnp.float32
                   ).at[:adjs[1].shape[0], :adjs[1].shape[1]].set(adjs[1]).astype(jnp.bfloat16)
    a2 = jnp.zeros((dst_pad2, dst_pad1), jnp.float32
                   ).at[:adjs[2].shape[0], :adjs[2].shape[1]].set(adjs[2]).astype(jnp.bfloat16)

    inputs = (x_dst, x_pad, a0, a1, a2, w0, w1, w2, e0, e1, e2)

    in_specs = [
        pl.BlockSpec((dst_pad0, f_in0), lambda k: (0, 0)),   # x_dst (resident)
        pl.BlockSpec((tk, f_in0), lambda k: (k, 0)),         # x, streamed over K
        pl.BlockSpec((dst_pad0, tk), lambda k: (0, k)),      # A0, streamed over K
        pl.BlockSpec(a1.shape, lambda k: (0, 0)),            # A1 (resident)
        pl.BlockSpec(a2.shape, lambda k: (0, 0)),            # A2 (resident)
        pl.BlockSpec(w0.shape, lambda k: (0, 0, 0)),
        pl.BlockSpec(w1.shape, lambda k: (0, 0, 0)),
        pl.BlockSpec(w2.shape, lambda k: (0, 0, 0)),
        pl.BlockSpec(e0.shape, lambda k: (0, 0)),
        pl.BlockSpec(e1.shape, lambda k: (0, 0)),
        pl.BlockSpec(e2.shape, lambda k: (0, 0)),
    ]
    out_specs = pl.BlockSpec((dst_pad2, f_out2), lambda k: (0, 0))
    out_shape = jax.ShapeDtypeStruct((dst_pad2, f_out2), jnp.float32)
    scratch_shapes = [pltpu.VMEM((dst_pad0, f_in0), jnp.float32)]  # layer-0 agg accumulator

    # VMEM budget from actual padded buffer sizes (x2 for double buffering) + epilogue temps.
    in_bytes = sum(int(a.size) * a.dtype.itemsize for a in inputs)
    out_bytes = dst_pad2 * f_out2 * 4
    scratch_bytes = dst_pad0 * f_in0 * 4
    tmp_bytes = 8 * dst_pad0 * max(f_in0, f_hid, f_out2) * 4
    vmem_needed = 2 * (in_bytes + out_bytes) + scratch_bytes + tmp_bytes + (4 << 20)
    vmem_limit = int(min(64 << 20, max(vmem_needed, 16 << 20)))

    flops = (2 * dst_pad0 * src_pad0 * f_in0          # A0 @ x
             + 2 * dst_pad1 * dst_pad0 * f_hid        # A1 @ h1
             + 2 * dst_pad2 * dst_pad1 * f_hid        # A2 @ h2
             + 2 * 2 * dst_pad0 * f_in0 * f_hid       # layer-0 combine (self + neigh)
             + 2 * 2 * dst_pad1 * f_hid * f_hid       # layer-1 combine
             + 2 * 2 * dst_pad2 * f_hid * f_out2)     # layer-2 combine
    cost = pl.CostEstimate(flops=flops, transcendentals=0,
                           bytes_accessed=in_bytes + out_bytes)

    grid_spec = pltpu.PrefetchScalarGridSpec(
        num_scalar_prefetch=0,
        grid=(num_k,),
        in_specs=in_specs,
        out_specs=out_specs,
        scratch_shapes=scratch_shapes,
    )

    out_pad = pl.pallas_call(
        functools.partial(_sage_fused_kernel, dst_pad1=dst_pad1, dst_pad2=dst_pad2),
        grid_spec=grid_spec,
        out_shape=out_shape,
        compiler_params=pltpu.CompilerParams(
            dimension_semantics=("arbitrary",),   # K reduction axis
            vmem_limit_bytes=vmem_limit),
        cost_estimate=cost,
    )(*inputs)
    return out_pad[:n_dst[-1], :out_size]


def _reference_forward(adjs, x, params):
    h = x
    n_layers = len(params["w_self"])
    for l in range(n_layers):
        a = adjs[l]
        hd = h[: a.shape[0]]
        hn = a @ h
        out = hd @ params["w_self"][l] + hn @ params["w_neigh"][l] + params["bias"][l]
        if l != n_layers - 1:
            out = out * params["bn_scale"][l] + params["bn_shift"][l]
            out = jnp.maximum(out, 0.0)
        h = out
    return h


def make_params(key, in_size, hid_size, out_size):
    dims = [(in_size, hid_size), (hid_size, hid_size), (hid_size, out_size)]
    params = {"w_self": [], "w_neigh": [], "bias": [], "bn_scale": [], "bn_shift": []}
    eps = 1e-5
    for l, (fi, fo) in enumerate(dims):
        key, k1, k2, k3 = jax.random.split(key, 4)
        params["w_self"].append(0.1 * jax.random.normal(k1, (fi, fo), jnp.float32))
        params["w_neigh"].append(0.1 * jax.random.normal(k2, (fi, fo), jnp.float32))
        params["bias"].append(0.1 * jax.random.normal(k3, (fo,), jnp.float32))
        if l != len(dims) - 1:
            key, kg, kb, km = jax.random.split(key, 4)
            gamma = 1.0 + 0.1 * jax.random.normal(kg, (fo,), jnp.float32)
            beta = 0.1 * jax.random.normal(kb, (fo,), jnp.float32)
            running_mean = 0.1 * jax.random.normal(km, (fo,), jnp.float32)
            running_var = jnp.ones((fo,), jnp.float32)
            scale = gamma / jnp.sqrt(running_var + eps)
            shift = beta - running_mean * scale
            params["bn_scale"].append(scale)
            params["bn_shift"].append(shift)
    return params


def make_block_adj(key, num_dst, num_src):
    """Random dense bipartite adjacency, row-normalized for mean aggregation."""
    mask = (jax.random.uniform(key, (num_dst, num_src)) < 0.3).astype(jnp.float32)
    deg = jnp.sum(mask, axis=1, keepdims=True)
    return mask / jnp.maximum(deg, 1.0)


if __name__ == "__main__":
    key = jax.random.PRNGKey(0)

    in_size, hid_size, out_size = 16, 32, 8
    # node counts per MFG block (src -> dst): 64 -> 32 -> 16 -> 8
    n0, n1, n2, n3 = 64, 32, 16, 8

    key, kx, ka0, ka1, ka2, kp = jax.random.split(key, 6)
    x = jax.random.normal(kx, (n0, in_size), jnp.float32)
    adjs = [
        make_block_adj(ka0, n1, n0),
        make_block_adj(ka1, n2, n1),
        make_block_adj(ka2, n3, n2),
    ]
    params = make_params(kp, in_size, hid_size, out_size)
    packed = pack_params(params)  # one-time weight packing, hoisted out of the per-call path

    fwd = jax.jit(functools.partial(sage_forward, out_size=out_size))
    out = jax.block_until_ready(fwd(adjs, x, packed))

    ref = _reference_forward(adjs, x, params)
    assert out.shape == (n3, out_size)
    # bf16 matmul operands (f32 accumulation) -> looser tolerance vs the pure-f32 reference.
    assert jnp.allclose(out, ref, atol=5e-2, rtol=5e-2), "mismatch vs reference"

    print("KERNEL_OK")
</pallas_src>

<mosaic_0001>
module attributes {stable_mosaic.version = 11 : i64} {
  func.func @_sage_fused_kernel(%arg0: i32, %arg1: memref<32x128xbf16, #tpu.memory_space<vmem>>, %arg2: memref<64x128xbf16, #tpu.memory_space<vmem>>, %arg3: memref<32x64xbf16, #tpu.memory_space<vmem>>, %arg4: memref<16x32xbf16, #tpu.memory_space<vmem>>, %arg5: memref<8x16xbf16, #tpu.memory_space<vmem>>, %arg6: memref<2x128x128xbf16, #tpu.memory_space<vmem>>, %arg7: memref<2x128x128xbf16, #tpu.memory_space<vmem>>, %arg8: memref<2x128x128xbf16, #tpu.memory_space<vmem>>, %arg9: memref<2x128xf32, #tpu.memory_space<vmem>>, %arg10: memref<2x128xf32, #tpu.memory_space<vmem>>, %arg11: memref<2x128xf32, #tpu.memory_space<vmem>>, %arg12: memref<8x128xf32, #tpu.memory_space<vmem>>, %arg13: memref<32x128xf32, #tpu.memory_space<vmem>>) attributes {dimension_semantics = [#tpu.dimension_semantics<arbitrary>], iteration_bounds = array<i64: 1>, scalar_prefetch = 0 : i64, scratch_operands = 1 : i64, tpu.core_type = #tpu.core_type<tc>, window_params = [{pipeline_mode = #tpu.pipeline_mode<synchronous>, transform_indices = @transform_0, window_bounds = array<i64: 32, 128>}, {transform_indices = @transform_1, window_bounds = array<i64: 64, 128>}, {transform_indices = @transform_2, window_bounds = array<i64: 32, 64>}, {pipeline_mode = #tpu.pipeline_mode<synchronous>, transform_indices = @transform_3, window_bounds = array<i64: 16, 32>}, {pipeline_mode = #tpu.pipeline_mode<synchronous>, transform_indices = @transform_4, window_bounds = array<i64: 8, 16>}, {pipeline_mode = #tpu.pipeline_mode<synchronous>, transform_indices = @transform_5, window_bounds = array<i64: 2, 128, 128>}, {pipeline_mode = #tpu.pipeline_mode<synchronous>, transform_indices = @transform_6, window_bounds = array<i64: 2, 128, 128>}, {pipeline_mode = #tpu.pipeline_mode<synchronous>, transform_indices = @transform_7, window_bounds = array<i64: 2, 128, 128>}, {pipeline_mode = #tpu.pipeline_mode<synchronous>, transform_indices = @transform_8, window_bounds = array<i64: 2, 128>}, {pipeline_mode = #tpu.pipeline_mode<synchronous>, transform_indices = @transform_9, window_bounds = array<i64: 2, 128>}, {pipeline_mode = #tpu.pipeline_mode<synchronous>, transform_indices = @transform_10, window_bounds = array<i64: 2, 128>}, {pipeline_mode = #tpu.pipeline_mode<synchronous>, transform_indices = @transform_11, window_bounds = array<i64: 8, 128>}]} {
    %c0_i32 = arith.constant 0 : i32
    %0 = arith.cmpi eq, %arg0, %c0_i32 : i32
    %1 = arith.extui %0 : i1 to i32
    %c0_i32_0 = arith.constant 0 : i32
    %2 = arith.cmpi ne, %1, %c0_i32_0 : i32
    scf.if %2 {
      %cst_10 = arith.constant 0.000000e+00 : f32
      %12 = vector.broadcast %cst_10 : f32 to vector<32x128xf32>
      %c0_11 = arith.constant 0 : index
      %c0_12 = arith.constant 0 : index
      %13 = vector.load %arg13[%c0_11, %c0_12] : memref<32x128xf32, #tpu.memory_space<vmem>>, vector<32x128xf32>
      tpu.vector_store %arg13[%c0_11, %c0_12], %12 {strides = array<i32>} : memref<32x128xf32, #tpu.memory_space<vmem>>, vector<32x128xf32>,
    } else {
    }
    %c0 = arith.constant 0 : index
    %c0_1 = arith.constant 0 : index
    %3 = vector.load %arg13[%c0, %c0_1] : memref<32x128xf32, #tpu.memory_space<vmem>>, vector<32x128xf32>
    %c0_2 = arith.constant 0 : index
    %c0_3 = arith.constant 0 : index
    %4 = vector.load %arg3[%c0_2, %c0_3] : memref<32x64xbf16, #tpu.memory_space<vmem>>, vector<32x64xbf16>
    %c0_4 = arith.constant 0 : index
    %c0_5 = arith.constant 0 : index
    %5 = vector.load %arg2[%c0_4, %c0_5] : memref<64x128xbf16, #tpu.memory_space<vmem>>, vector<64x128xbf16>
    %cst = arith.constant dense<0.000000e+00> : vector<32x128xf32>
    %6 = tpu.matmul %4, %5, %cst {dimension_numbers = #tpu.dot_dimension_numbers<[1], [0], [0], [1], [0, 0, 1, 1], [], []>} : vector<32x64xbf16>, vector<64x128xbf16>, vector<32x128xf32> -> vector<32x128xf32>
    %7 = arith.addf %3, %6 : vector<32x128xf32>
    %c0_6 = arith.constant 0 : index
    %c0_7 = arith.constant 0 : index
    %8 = vector.load %arg13[%c0_6, %c0_7] : memref<32x128xf32, #tpu.memory_space<vmem>>, vector<32x128xf32>
    tpu.vector_store %arg13[%c0_6, %c0_7], %7 {strides = array<i32>} : memref<32x128xf32, #tpu.memory_space<vmem>>, vector<32x128xf32>,
    %c0_i32_8 = arith.constant 0 : i32
    %9 = arith.cmpi eq, %arg0, %c0_i32_8 : i32
    %10 = arith.extui %9 : i1 to i32
    %c0_i32_9 = arith.constant 0 : i32
    %11 = arith.cmpi ne, %10, %c0_i32_9 : i32
    scf.if %11 {
      %c0_10 = arith.constant 0 : index
      %c0_11 = arith.constant 0 : index
      %12 = vector.load %arg1[%c0_10, %c0_11] : memref<32x128xbf16, #tpu.memory_space<vmem>>, vector<32x128xbf16>
      %c0_12 = arith.constant 0 : index
      %c0_13 = arith.constant 0 : index
      %13 = vector.load %arg13[%c0_12, %c0_13] : memref<32x128xf32, #tpu.memory_space<vmem>>, vector<32x128xf32>
      %c0_14 = arith.constant 0 : index
      %c0_15 = arith.constant 0 : index
      %c0_16 = arith.constant 0 : index
      %14 = vector.load %arg6[%c0_14, %c0_15, %c0_16] : memref<2x128x128xbf16, #tpu.memory_space<vmem>>, vector<1x128x128xbf16>
      %15 = vector.shape_cast %14 : vector<1x128x128xbf16> to vector<128x128xbf16>
      %cst_17 = arith.constant dense<0.000000e+00> : vector<32x128xf32>
      %16 = tpu.matmul %12, %15, %cst_17 {dimension_numbers = #tpu.dot_dimension_numbers<[1], [0], [0], [1], [0, 0, 1, 1], [], []>} : vector<32x128xbf16>, vector<128x128xbf16>, vector<32x128xf32> -> vector<32x128xf32>
      %17 = arith.truncf %13 : vector<32x128xf32> to vector<32x128xbf16>
      %c1 = arith.constant 1 : index
      %c0_18 = arith.constant 0 : index
      %c0_19 = arith.constant 0 : index
      %18 = vector.load %arg6[%c1, %c0_18, %c0_19] : memref<2x128x128xbf16, #tpu.memory_space<vmem>>, vector<1x128x128xbf16>
      %19 = vector.shape_cast %18 : vector<1x128x128xbf16> to vector<128x128xbf16>
      %cst_20 = arith.constant dense<0.000000e+00> : vector<32x128xf32>
      %20 = tpu.matmul %17, %19, %cst_20 {dimension_numbers = #tpu.dot_dimension_numbers<[1], [0], [0], [1], [0, 0, 1, 1], [], []>} : vector<32x128xbf16>, vector<128x128xbf16>, vector<32x128xf32> -> vector<32x128xf32>
      %21 = arith.addf %16, %20 : vector<32x128xf32>
      %c0_21 = arith.constant 0 : index
      %c0_22 = arith.constant 0 : index
      %22 = vector.load %arg9[%c0_21, %c0_22] : memref<2x128xf32, #tpu.memory_space<vmem>>, vector<1x128xf32>
      %23 = vector.broadcast %22 : vector<1x128xf32> to vector<32x128xf32>
      %24 = arith.mulf %21, %23 : vector<32x128xf32>
      %c1_23 = arith.constant 1 : index
      %c0_24 = arith.constant 0 : index
      %25 = vector.load %arg9[%c1_23, %c0_24] : memref<2x128xf32, #tpu.memory_space<vmem>>, vector<1x128xf32>
      %26 = vector.broadcast %25 : vector<1x128xf32> to vector<32x128xf32>
      %27 = arith.addf %24, %26 : vector<32x128xf32>
      %cst_25 = arith.constant 0.000000e+00 : f32
      %28 = vector.broadcast %cst_25 : f32 to vector<32x128xf32>
      %29 = arith.maximumf %27, %28 : vector<32x128xf32>
      %30 = arith.truncf %29 : vector<32x128xf32> to vector<32x128xbf16>
      %c0_26 = arith.constant 0 : index
      %c0_27 = arith.constant 0 : index
      %31 = vector.load %arg4[%c0_26, %c0_27] : memref<16x32xbf16, #tpu.memory_space<vmem>>, vector<16x32xbf16>
      %cst_28 = arith.constant dense<0.000000e+00> : vector<16x128xf32>
      %32 = tpu.matmul %31, %30, %cst_28 {dimension_numbers = #tpu.dot_dimension_numbers<[1], [0], [0], [1], [0, 0, 1, 1], [], []>} : vector<16x32xbf16>, vector<32x128xbf16>, vector<16x128xf32> -> vector<16x128xf32>
      %33 = vector.extract_strided_slice %30 {offsets = [0, 0], sizes = [16, 128], strides = [1, 1]} : vector<32x128xbf16> to vector<16x128xbf16>
      %c0_29 = arith.constant 0 : index
      %c0_30 = arith.constant 0 : index
      %c0_31 = arith.constant 0 : index
      %34 = vector.load %arg7[%c0_29, %c0_30, %c0_31] : memref<2x128x128xbf16, #tpu.memory_space<vmem>>, vector<1x128x128xbf16>
      %35 = vector.shape_cast %34 : vector<1x128x128xbf16> to vector<128x128xbf16>
      %cst_32 = arith.constant dense<0.000000e+00> : vector<16x128xf32>
      %36 = tpu.matmul %33, %35, %cst_32 {dimension_numbers = #tpu.dot_dimension_numbers<[1], [0], [0], [1], [0, 0, 1, 1], [], []>} : vector<16x128xbf16>, vector<128x128xbf16>, vector<16x128xf32> -> vector<16x128xf32>
      %37 = arith.truncf %32 : vector<16x128xf32> to vector<16x128xbf16>
      %c1_33 = arith.constant 1 : index
      %c0_34 = arith.constant 0 : index
      %c0_35 = arith.constant 0 : index
      %38 = vector.load %arg7[%c1_33, %c0_34, %c0_35] : memref<2x128x128xbf16, #tpu.memory_space<vmem>>, vector<1x128x128xbf16>
      %39 = vector.shape_cast %38 : vector<1x128x128xbf16> to vector<128x128xbf16>
      %cst_36 = arith.constant dense<0.000000e+00> : vector<16x128xf32>
      %40 = tpu.matmul %37, %39, %cst_36 {dimension_numbers = #tpu.dot_dimension_numbers<[1], [0], [0], [1], [0, 0, 1, 1], [], []>} : vector<16x128xbf16>, vector<128x128xbf16>, vector<16x128xf32> -> vector<16x128xf32>
      %41 = arith.addf %36, %40 : vector<16x128xf32>
      %c0_37 = arith.constant 0 : index
      %c0_38 = arith.constant 0 : index
      %42 = vector.load %arg10[%c0_37, %c0_38] : memref<2x128xf32, #tpu.memory_space<vmem>>, vector<1x128xf32>
      %43 = vector.broadcast %42 : vector<1x128xf32> to vector<16x128xf32>
      %44 = arith.mulf %41, %43 : vector<16x128xf32>
      %c1_39 = arith.constant 1 : index
      %c0_40 = arith.constant 0 : index
      %45 = vector.load %arg10[%c1_39, %c0_40] : memref<2x128xf32, #tpu.memory_space<vmem>>, vector<1x128xf32>
      %46 = vector.broadcast %45 : vector<1x128xf32> to vector<16x128xf32>
      %47 = arith.addf %44, %46 : vector<16x128xf32>
      %cst_41 = arith.constant 0.000000e+00 : f32
      %48 = vector.broadcast %cst_41 : f32 to vector<16x128xf32>
      %49 = arith.maximumf %47, %48 : vector<16x128xf32>
      %50 = arith.truncf %49 : vector<16x128xf32> to vector<16x128xbf16>
      %c0_42 = arith.constant 0 : index
      %c0_43 = arith.constant 0 : index
      %51 = vector.load %arg5[%c0_42, %c0_43] : memref<8x16xbf16, #tpu.memory_space<vmem>>, vector<8x16xbf16>
      %cst_44 = arith.constant dense<0.000000e+00> : vector<8x128xf32>
      %52 = tpu.matmul %51, %50, %cst_44 {dimension_numbers = #tpu.dot_dimension_numbers<[1], [0], [0], [1], [0, 0, 1, 1], [], []>} : vector<8x16xbf16>, vector<16x128xbf16>, vector<8x128xf32> -> vector<8x128xf32>
      %53 = vector.extract_strided_slice %50 {offsets = [0, 0], sizes = [8, 128], strides = [1, 1]} : vector<16x128xbf16> to vector<8x128xbf16>
      %c0_45 = arith.constant 0 : index
      %c0_46 = arith.constant 0 : index
      %c0_47 = arith.constant 0 : index
      %54 = vector.load %arg8[%c0_45, %c0_46, %c0_47] : memref<2x128x128xbf16, #tpu.memory_space<vmem>>, vector<1x128x128xbf16>
      %55 = vector.shape_cast %54 : vector<1x128x128xbf16> to vector<128x128xbf16>
      %cst_48 = arith.constant dense<0.000000e+00> : vector<8x128xf32>
      %56 = tpu.matmul %53, %55, %cst_48 {dimension_numbers = #tpu.dot_dimension_numbers<[1], [0], [0], [1], [0, 0, 1, 1], [], []>} : vector<8x128xbf16>, vector<128x128xbf16>, vector<8x128xf32> -> vector<8x128xf32>
      %57 = arith.truncf %52 : vector<8x128xf32> to vector<8x128xbf16>
      %c1_49 = arith.constant 1 : index
      %c0_50 = arith.constant 0 : index
      %c0_51 = arith.constant 0 : index
      %58 = vector.load %arg8[%c1_49, %c0_50, %c0_51] : memref<2x128x128xbf16, #tpu.memory_space<vmem>>, vector<1x128x128xbf16>
      %59 = vector.shape_cast %58 : vector<1x128x128xbf16> to vector<128x128xbf16>
      %cst_52 = arith.constant dense<0.000000e+00> : vector<8x128xf32>
      %60 = tpu.matmul %57, %59, %cst_52 {dimension_numbers = #tpu.dot_dimension_numbers<[1], [0], [0], [1], [0, 0, 1, 1], [], []>} : vector<8x128xbf16>, vector<128x128xbf16>, vector<8x128xf32> -> vector<8x128xf32>
      %61 = arith.addf %56, %60 : vector<8x128xf32>
      %c0_53 = arith.constant 0 : index
      %c0_54 = arith.constant 0 : index
      %62 = vector.load %arg11[%c0_53, %c0_54] : memref<2x128xf32, #tpu.memory_space<vmem>>, vector<1x128xf32>
      %63 = vector.broadcast %62 : vector<1x128xf32> to vector<8x128xf32>
      %64 = arith.mulf %61, %63 : vector<8x128xf32>
      %c1_55 = arith.constant 1 : index
      %c0_56 = arith.constant 0 : index
      %65 = vector.load %arg11[%c1_55, %c0_56] : memref<2x128xf32, #tpu.memory_space<vmem>>, vector<1x128xf32>
      %66 = vector.broadcast %65 : vector<1x128xf32> to vector<8x128xf32>
      %67 = arith.addf %64, %66 : vector<8x128xf32>
      %c0_57 = arith.constant 0 : index
      %c0_58 = arith.constant 0 : index
      %68 = vector.load %arg12[%c0_57, %c0_58] : memref<8x128xf32, #tpu.memory_space<vmem>>, vector<8x128xf32>
      tpu.vector_store %arg12[%c0_57, %c0_58], %67 {strides = array<i32>} : memref<8x128xf32, #tpu.memory_space<vmem>>, vector<8x128xf32>,
    } else {
    }
    return
  }
  func.func @transform_0(%arg0: i32) -> (i32, i32) {
    %c0_i32 = arith.constant 0 : i32
    %c0_i32_0 = arith.constant 0 : i32
    %c0_i32_1 = arith.constant 0 : i32
    return %c0_i32, %c0_i32_0 : i32, i32
  }
  func.func @transform_1(%arg0: i32) -> (i32, i32) {
    %c0_i32 = arith.constant 0 : i32
    %c0_i32_0 = arith.constant 0 : i32
    return %arg0, %c0_i32 : i32, i32
  }
  func.func @transform_2(%arg0: i32) -> (i32, i32) {
    %c0_i32 = arith.constant 0 : i32
    %c0_i32_0 = arith.constant 0 : i32
    return %c0_i32, %arg0 : i32, i32
  }
  func.func @transform_3(%arg0: i32) -> (i32, i32) {
    %c0_i32 = arith.constant 0 : i32
    %c0_i32_0 = arith.constant 0 : i32
    %c0_i32_1 = arith.constant 0 : i32
    return %c0_i32, %c0_i32_0 : i32, i32
  }
  func.func @transform_4(%arg0: i32) -> (i32, i32) {
    %c0_i32 = arith.constant 0 : i32
    %c0_i32_0 = arith.constant 0 : i32
    %c0_i32_1 = arith.constant 0 : i32
    return %c0_i32, %c0_i32_0 : i32, i32
  }
  func.func @transform_5(%arg0: i32) -> (i32, i32, i32) {
    %c0_i32 = arith.constant 0 : i32
    %c0_i32_0 = arith.constant 0 : i32
    %c0_i32_1 = arith.constant 0 : i32
    %c0_i32_2 = arith.constant 0 : i32
    return %c0_i32, %c0_i32_0, %c0_i32_1 : i32, i32, i32
  }
  func.func @transform_6(%arg0: i32) -> (i32, i32, i32) {
    %c0_i32 = arith.constant 0 : i32
    %c0_i32_0 = arith.constant 0 : i32
    %c0_i32_1 = arith.constant 0 : i32
    %c0_i32_2 = arith.constant 0 : i32
    return %c0_i32, %c0_i32_0, %c0_i32_1 : i32, i32, i32
  }
  func.func @transform_7(%arg0: i32) -> (i32, i32, i32) {
    %c0_i32 = arith.constant 0 : i32
    %c0_i32_0 = arith.constant 0 : i32
    %c0_i32_1 = arith.constant 0 : i32
    %c0_i32_2 = arith.constant 0 : i32
    return %c0_i32, %c0_i32_0, %c0_i32_1 : i32, i32, i32
  }
  func.func @transform_8(%arg0: i32) -> (i32, i32) {
    %c0_i32 = arith.constant 0 : i32
    %c0_i32_0 = arith.constant 0 : i32
    %c0_i32_1 = arith.constant 0 : i32
    return %c0_i32, %c0_i32_0 : i32, i32
  }
  func.func @transform_9(%arg0: i32) -> (i32, i32) {
    %c0_i32 = arith.constant 0 : i32
    %c0_i32_0 = arith.constant 0 : i32
    %c0_i32_1 = arith.constant 0 : i32
    return %c0_i32, %c0_i32_0 : i32, i32
  }
  func.func @transform_10(%arg0: i32) -> (i32, i32) {
    %c0_i32 = arith.constant 0 : i32
    %c0_i32_0 = arith.constant 0 : i32
    %c0_i32_1 = arith.constant 0 : i32
    return %c0_i32, %c0_i32_0 : i32, i32
  }
  func.func @transform_11(%arg0: i32) -> (i32, i32) {
    %c0_i32 = arith.constant 0 : i32
    %c0_i32_0 = arith.constant 0 : i32
    %c0_i32_1 = arith.constant 0 : i32
    return %c0_i32, %c0_i32_0 : i32, i32
  }
}

</mosaic_0001>

<bundles_post_ra>
// kernel: sage_forward.1
= control target key start
LH: loop header
LB: loop body
LE: loop exit
PB: predicated region body
PF: predicated region fallthrough
CT: control target
= control target key end

     0   :  { %16 = vsyncpa [#allocation4], 0  ;;  %s1734_s0 = inlined_call_operand.vmem [shape: bf16[32,128], index: 0, kind: input, shape index: {}]   ;;  %s1735_s1 = inlined_call_operand.vmem [shape: bf16[64,128], index: 1, kind: input, shape index: {}]   ;;  %s1736_s2 = inlined_call_operand.vmem [shape: bf16[32,64], index: 2, kind: input, shape index: {}]   ;;  %s1737_s3 = inlined_call_operand.vmem [shape: bf16[16,32], index: 3, kind: input, shape index: {}]   ;;  %s1738_s4 = inlined_call_operand.vmem [shape: bf16[8,16], index: 4, kind: input, shape index: {}]   ;;  %s1739_s5 = inlined_call_operand.vmem [shape: bf16[2,128,128], index: 5, kind: input, shape index: {}]   ;;  %s1740_s6 = inlined_call_operand.vmem [shape: bf16[2,128,128], index: 6, kind: input, shape index: {}]   ;;  %s1741_s7 = inlined_call_operand.hbm [shape: bf16[2,128,128], index: 7, kind: input, shape index: {}]   ;;  %s1742_s8 = inlined_call_operand.vmem [shape: f32[2,128], index: 8, kind: input, shape index: {}]   ;;  %s1743_s9 = inlined_call_operand.vmem [shape: f32[2,128], index: 9, kind: input, shape index: {}]   ;;  %s1744_s10 = inlined_call_operand.vmem [shape: f32[2,128], index: 10, kind: input, shape index: {}]   ;;  %s1745_s11 = inlined_call_operand.hbm [shape: f32[8,128], index: 11, kind: output, shape index: {}]  }
   0x1   :  { %17 = vsyncpa [#allocation5], 0  ;;  %s1451_s17 = smov [#allocation3]   ;;  %s1403_s21 = scalar_lea.hbm %s1741_s7, 2048 }
   0x2   :  { %s37_s18 = sshll.u32 %s1451_s17, 4  ;;  %p1404_p0 = scmp.ne.s32.totalorder %s1741_s7, %s1403_s21  ;;  %s38_s18 = int_to_ptr.vmem [resolvable:$true] %s37_s18 }
   0x3   :  { %p1407_p1 = scmp.lt.u32.totalorder %s1403_s21, %s1741_s7 }
   0x5   :  { %p1409_p2 = pnand %p1407_p1, %p1404_p0 }
   0x7   :  { %1412 = shalt.err (!%p1409_p2)
}
   0x8   :  { %s1413_s26 = scalar_lea.vmem %s38_s18, 2048  ;;  %p1418_p4 = scmp.lt.s32.totalorder %s38_s18, %s38_s18 }
   0x9   :  { %p1414_p3 = scmp.ne.s32.totalorder %s38_s18, %s1413_s26  ;;  %p1419_p5 = scmp.lt.s32.totalorder %s1413_s26, %s1413_s26 }
   0xb   :  { %p1420_p6 = por %p1419_p5, %p1418_p4 }
   0xd   :  { %p1421_p7 = pnand %p1420_p6, %p1414_p3 }
   0xf   :  { %1424 = shalt.err (!%p1421_p7)
}
  0x10   :  { %s1452_s27 = smov 64   ;;  %s1453_s28 = smov 4  }
  0x11   :  { %43 = dma.hbm_to_vmem [thread:$0]  %s1741_s7, 2048, %s38_s18, [#allocation4], %s1452_s27, %s1452_s27, %s1453_s28  }
  0x12   :  { %1447 = dma.done.wait [#allocation4], 2048  }
  0x13   :  { %1448 = vsyncadd [#allocation4], 4294965248  ;;  %v1346_v0 = vld [vmem:[%s1735_s1] sm:$0xff]   ;;  %v1347_v1 = vld [vmem:[%s1735_s1 + $0x8] sm:$0xff]   ;;  %vm112_vm0 = vcmask 523264   ;;  %v1454_v34 = vmov 0.0  }
  0x14   :  { %1182 = vmatprep.subr.bf16.mxu0 %v1346_v0  ;;  %v1348_v2 = vld [vmem:[%s1735_s1 + $0x10] sm:$0xff]   ;;  %v1350_v3 = vld [vmem:[%s1736_s2] sm:$0xff]   ;;  %v1349_v5 = vld [vmem:[%s1735_s1 + $0x18] sm:$0xff]   ;;  %vm1455_vm1 = vmmov 0   ;;  %vm459_vm2 = vcmask 261120   ;;  %vm734_vm3 = vcmask 130048  }
  0x15   :  { %1183 = vmatpush3.bf16.msra.mxu0 %v1346_v0  ;;  %1190 = vmatprep.mubr.msk.bf16.mxu0 %vm112_vm0, %v1350_v3  ;;  %v1352_v4 = vld [vmem:[%s1739_s5] sm:$0xff]   ;;  %v1354_v6 = vld [vmem:[%s1739_s5 + $0x8] sm:$0xff]   ;;  %v1356_v7 = vld [vmem:[%s1739_s5 + $0x10] sm:$0xff]   ;;  %s1456_s30 = smov [#allocation6]  }
  0x16   :  { %1184 = vmatprep.subr.bf16.mxu0 %v1347_v1  ;;  %1214 = vmatprep.subr.bf16.mxu1 %v1352_v4  ;;  %v1353_v8 = vld [vmem:[%s1739_s5 + $0x40] sm:$0xff]   ;;  %v1351_v9 = vld [vmem:[%s1736_s2 + $0x8] sm:$0xff]   ;;  %v1358_v10 = vld [vmem:[%s1739_s5 + $0x18] sm:$0xff]   ;;  %s1007_s12 = sshll.u32 %s1456_s30, 4  ;;  %s1008_s12 = int_to_ptr.vmem [resolvable:$true] %s1007_s12 }
  0x17   :  { %1215 = vmatpush3.bf16.msra.mxu1 %v1352_v4  ;;  %v1355_v11 = vld [vmem:[%s1739_s5 + $0x48] sm:$0xff]   ;;  %v1360_v12 = vld [vmem:[%s1739_s5 + $0x20] sm:$0xff]   ;;  %v1357_v13 = vld [vmem:[%s1739_s5 + $0x50] sm:$0xff]   ;;  %s1425_s13 = scalar_lea.vmem %s1008_s12, 128  ;;  %p1430_p9 = scmp.lt.s32.totalorder %s1008_s12, %s1008_s12 }
  0x18   :  { %1216 = vmatprep.subr.bf16.mxu1 %v1354_v6  ;;  %v1362_v14 = vld [vmem:[%s1739_s5 + $0x28] sm:$0xff]   ;;  %v1359_v15 = vld [vmem:[%s1739_s5 + $0x58] sm:$0xff]   ;;  %v1364_v16 = vld [vmem:[%s1739_s5 + $0x30] sm:$0xff]   ;;  %p1426_p8 = scmp.ne.s32.totalorder %s1008_s12, %s1425_s13  ;;  %p1431_p10 = scmp.lt.s32.totalorder %s1425_s13, %s1425_s13 }
  0x19   :  { %1185 = vmatpush3.bf16.msra.mxu0 %v1347_v1  ;;  %v1361_v17 = vld [vmem:[%s1739_s5 + $0x60] sm:$0xff]   ;;  %v1363_v18 = vld [vmem:[%s1739_s5 + $0x68] sm:$0xff]   ;;  %v1365_v19 = vld [vmem:[%s1739_s5 + $0x70] sm:$0xff]  }
  0x1a   :  { %1186 = vmatprep.subr.bf16.mxu0 %v1348_v2  ;;  %v1366_v20 = vld [vmem:[%s1739_s5 + $0x38] sm:$0xff]   ;;  %v1368_v22 = vld [vmem:[%s1734_s0] sm:$0xff]   ;;  %v1369_v23 = vld [vmem:[%s1734_s0 + $0x8] sm:$0xff]   ;;  %p1432_p11 = por %p1431_p10, %p1430_p9 }
  0x1b   :  { %1217 = vmatpush3.bf16.msra.mxu1 %v1354_v6  ;;  %v1367_v21 = vld [vmem:[%s1739_s5 + $0x78] sm:$0xff]   ;;  %1230 = vmatprep.mubr.bf16.mxu1 %v1368_v22  ;;  %v1371_v35 = vld [vmem:[%s1740_s6 + $0x40] sm:$0xff]   ;;  %v1372_v36 = vld [vmem:[%s1740_s6 + $0x48] sm:$0xff]  }
  0x1c   :  { %1218 = vmatprep.subr.bf16.mxu1 %v1356_v7  ;;  %v1373_v37 = vld [vmem:[%s1740_s6 + $0x50] sm:$0xff]   ;;  %v1374_v38 = vld [vmem:[%s1740_s6 + $0x58] sm:$0xff]   ;;  %v1375_v39 = vld [vmem:[%s1740_s6 + $0x60] sm:$0xff]   ;;  %p1433_p12 = pnand %p1432_p11, %p1426_p8 }
  0x1d   :  { %1187 = vmatpush3.bf16.msra.mxu0 %v1348_v2  ;;  %v1376_v40 = vld [vmem:[%s1740_s6 + $0x68] sm:$0xff]   ;;  %v1377_v41 = vld [vmem:[%s1740_s6 + $0x70] sm:$0xff]   ;;  %v1058_v43 = vld [vmem:[%s1742_s8] ss:$0 sm:$0xff] }
  0x1e   :  { %1188 = vmatprep.subr.bf16.mxu0 %v1349_v5  ;;  %v1059_v46 = vld [vmem:[%s1742_s8 + $0x1] ss:$0 sm:$0xff]  ;;  %v1378_v3 = vld [vmem:[%s1740_s6 + $0x78] sm:$0xff]  }
  0x1f   :  { %1219 = vmatpush3.bf16.msra.mxu1 %v1356_v7  ;;  %v1370_v2 = vld [vmem:[%s1737_s3] sm:$0xff]  }
  0x20   :  { %1220 = vmatprep.subr.bf16.mxu1 %v1358_v10  ;;  %v1379_v7 = vld [vmem:[%s1740_s6] sm:$0xff]  }
  0x21   :  { %1189 = vmatpush3.bf16.msra.mxu0 %v1349_v5 }
  0x22   :  { %1194 = vmatprep.subr.bf16.mxu0 %v1353_v8 }
  0x23   :  { %1221 = vmatpush3.bf16.msra.mxu1 %v1358_v10  ;;  %v1380_v10 = vld [vmem:[%s1740_s6 + $0x8] sm:$0xff]  }
  0x24   :  { %1191 = vmatmul.mubr.msk.bf16.vlgmr.msra.gmra.mrb[0].mxu0 %vm112_vm0, %v1351_v9  ;;  %1222 = vmatprep.subr.bf16.mxu1 %v1360_v12 }
  0x25   :  { %1195 = vmatpush3.bf16.msra.mxu0 %v1353_v8 }
  0x26   :  { %1196 = vmatprep.subr.bf16.mxu0 %v1355_v11 }
  0x27   :  { %1223 = vmatpush3.bf16.msra.mxu1 %v1360_v12  ;;  %v1382_v12 = vld [vmem:[%s1740_s6 + $0x18] sm:$0xff]  }
  0x28   :  { %1224 = vmatprep.subr.bf16.mxu1 %v1362_v14 }
  0x29   :  { %1197 = vmatpush3.bf16.msra.mxu0 %v1355_v11  ;;  %v1381_v11 = vld [vmem:[%s1740_s6 + $0x10] sm:$0xff]  }
  0x2a   :  { %1198 = vmatprep.subr.bf16.mxu0 %v1357_v13 }
  0x2b   :  { %1225 = vmatpush3.bf16.msra.mxu1 %v1362_v14  ;;  %v1384_v14 = vld [vmem:[%s1740_s6 + $0x28] sm:$0xff]  }
  0x2c   :  { %1226 = vmatprep.subr.bf16.mxu1 %v1364_v16 }
  0x2d   :  { %1199 = vmatpush3.bf16.msra.mxu0 %v1357_v13  ;;  %v1383_v13 = vld [vmem:[%s1740_s6 + $0x20] sm:$0xff]  }
  0x2e   :  { %1200 = vmatprep.subr.bf16.mxu0 %v1359_v15 }
  0x2f   :  { %1227 = vmatpush3.bf16.msra.mxu1 %v1364_v16  ;;  %v1386_v16 = vld [vmem:[%s1740_s6 + $0x38] sm:$0xff]  }
  0x30   :  { %1228 = vmatprep.subr.bf16.mxu1 %v1366_v20 }
  0x31   :  { %1201 = vmatpush3.bf16.msra.mxu0 %v1359_v15  ;;  %v1385_v15 = vld [vmem:[%s1740_s6 + $0x30] sm:$0xff]  }
  0x32   :  { %1202 = vmatprep.subr.bf16.mxu0 %v1361_v17 }
  0x33   :  { %1229 = vmatpush3.bf16.msra.mxu1 %v1366_v20 }
  0x34   :  { %1234 = vmatprep.subr.bf16.mxu1 %v1454_v34 }
  0x35   :  { %1203 = vmatpush3.bf16.msra.mxu0 %v1361_v17  ;;  %v1094_v17 = vld [vmem:[%s1743_s9] ss:$0 sm:$0xff] }
  0x36   :  { %1204 = vmatprep.subr.bf16.mxu0 %v1363_v18  ;;  %1231 = vmatmul.mubr.bf16.vlgmr.msra.gmra.mrb[0].mxu1 %v1369_v23 }
  0x37   :  { %1238 = vmatprep.mubr.msk.bf16.mxu1 %vm1455_vm1, %v1454_v34 }
  0x39   :  { %1205 = vmatpush3.bf16.msra.mxu0 %v1363_v18 }
  0x3a   :  { %1206 = vmatprep.subr.bf16.mxu0 %v1365_v19 }
  0x3d   :  { %1207 = vmatpush3.bf16.msra.mxu0 %v1365_v19  ;;  %v1095_v19 = vld [vmem:[%s1743_s9 + $0x1] ss:$0 sm:$0xff] }
  0x3e   :  { %1208 = vmatprep.subr.bf16.mxu0 %v1367_v21 }
  0x41   :  { %1209 = vmatpush3.bf16.msra.mxu0 %v1367_v21 }
  0x42   :  { %1242 = vmatprep.subr.bf16.mxu0 %v1454_v34 }
  0xf7   :  { %v1192_v24 = vpop.f32.mrb[0].mxu0 }
  0xf8   :  { %v153_v25 = vpop.f32.mrb[1].mxu0 }
  0xf9   :  { %v1193_v26 = vpop.f32.mrb[2].mxu0 }
  0xfa   :  { %v204_v27 = vpack.c.bf16 %v1193_v26, %v1192_v24  ;;  %v156_v28 = vpop.f32.mrb[3].mxu0 }
  0xfb   :  { %v203_v29 = vpack.c.bf16 %v156_v28, %v153_v25 }
  0xfd   :  { %1210 = vmatprep.mubr.bf16.mxu0 %v203_v29 }
  0xfe   :  { %1211 = vmatmul.mubr.bf16.vlgmr.msra.gmra.mrb[4].mxu0 %v204_v27 }
  0xff   :  { %1258 = vmatprep.mubr.msk.bf16.mxu0 %vm1455_vm1, %v1454_v34  ;;  %1243 = vmatpush3.bf16.msra.mxu0 %v1371_v35  ;;  %v1390_v35 = vld [vmem:[#allocation3 + $0x58] sm:$0xff]  }
 0x100   :  { %1244 = vmatprep.subr.bf16.mxu0 %v1454_v34 }
 0x103   :  { %1245 = vmatpush3.bf16.msra.mxu0 %v1372_v36  ;;  %v1391_v36 = vld [vmem:[#allocation3 + $0x60] sm:$0xff]  }
 0x104   :  { %1246 = vmatprep.subr.bf16.mxu0 %v1454_v34 }
 0x107   :  { %1247 = vmatpush3.bf16.msra.mxu0 %v1373_v37  ;;  %v1392_v37 = vld [vmem:[#allocation3 + $0x68] sm:$0xff]  }
 0x108   :  { %1248 = vmatprep.subr.bf16.mxu0 %v1454_v34 }
 0x109   :  { %v1232_v30 = vpop.f32.mrb[0].mxu1 }
 0x10a   :  { %v413_v31 = vpop.f32.mrb[1].mxu1 }
 0x10b   :  { %v1233_v32 = vpop.f32.mrb[2].mxu1  ;;  %1249 = vmatpush3.bf16.msra.mxu0 %v1374_v38  ;;  %v1393_v38 = vld [vmem:[#allocation3 + $0x70] sm:$0xff]  }
 0x10c   :  { %v416_v33 = vpop.f32.mrb[3].mxu1  ;;  %1250 = vmatprep.subr.bf16.mxu0 %v1454_v34 }
 0x10f   :  { %1251 = vmatpush3.bf16.msra.mxu0 %v1375_v39  ;;  %v1394_v39 = vld [vmem:[#allocation3 + $0x78] sm:$0xff]  }
 0x110   :  { %1252 = vmatprep.subr.bf16.mxu0 %v1454_v34 }
 0x113   :  { %1253 = vmatpush3.bf16.msra.mxu0 %v1376_v40 }
 0x114   :  { %1254 = vmatprep.subr.bf16.mxu0 %v1454_v34 }
 0x117   :  { %1255 = vmatpush3.bf16.msra.mxu0 %v1377_v41  ;;  %v1395_v41 = vld [vmem:[#allocation3] sm:$0xff]  }
 0x118   :  { %1256 = vmatprep.subr.bf16.mxu0 %v1454_v34 }
 0x11b   :  { %1257 = vmatpush3.bf16.msra.mxu0 %v1378_v3 }
 0x11c   :  { %1262 = vmatprep.subr.bf16.mxu0 %v1454_v34 }
 0x1d1   :  { %v1212_v42 = vpop.f32.mrb[4].mxu0 }
 0x1d2   :  { %v422_v44 = vadd.f32 %v1232_v30, %v1212_v42  ;;  %v304_v45 = vpop.f32.mrb[5].mxu0  ;;  %v733_v30 = vld [vmem:[%s1738_s4] sm:$0xf] }
 0x1d3   :  { %v414_v47 = vadd.f32 %v413_v31, %v304_v45  ;;  %v1213_v48 = vpop.f32.mrb[6].mxu0  ;;  %v1387_v31 = vld [vmem:[#allocation3 + $0x40] sm:$0xff]  }
 0x1d4   :  { %v435_v49 = vmul.f32 %v1058_v43, %v422_v44  ;;  %v425_v50 = vadd.f32 %v1233_v32, %v1213_v48  ;;  %v307_v51 = vpop.f32.mrb[7].mxu0  ;;  %v1388_v32 = vld [vmem:[#allocation3 + $0x48] sm:$0xff]   ;;  %v1398_v48 = vld [vmem:[#allocation3 + $0x18] sm:$0xff]  }
 0x1d5   :  { %v433_v52 = vmul.f32 %v1058_v43, %v414_v47  ;;  %v417_v53 = vadd.f32 %v416_v33, %v307_v51  ;;  %v1389_v33 = vld [vmem:[#allocation3 + $0x50] sm:$0xff]  }
 0x1d6   :  { %v444_v54 = vadd.f32 %v1059_v46, %v435_v49  ;;  %v436_v55 = vmul.f32 %v1058_v43, %v425_v50  ;;  %v1397_v47 = vld [vmem:[#allocation3 + $0x10] sm:$0xff]   ;;  %v1399_v49 = vld [vmem:[#allocation3 + $0x20] sm:$0xff]   ;;  %v1400_v50 = vld [vmem:[#allocation3 + $0x28] sm:$0xff]  }
 0x1d7   :  { %v442_v56 = vadd.f32 %v1059_v46, %v433_v52  ;;  %v434_v57 = vmul.f32 %v1058_v43, %v417_v53  ;;  %v1401_v51 = vld [vmem:[#allocation3 + $0x30] sm:$0xff]   ;;  %v1402_v52 = vld [vmem:[#allocation3 + $0x38] sm:$0xff]   ;;  %v1113_v53 = vld [vmem:[%s1744_s10] ss:$0 sm:$0xff] }
 0x1d8   :  { %v445_v58 = vadd.f32 %v1059_v46, %v436_v55  ;;  %v448_v60 = vmax.f32 %v444_v54, 0.0  ;;  %v1114_v55 = vld [vmem:[%s1744_s10 + $0x1] ss:$0 sm:$0xff] }
 0x1d9   :  { %v443_v59 = vadd.f32 %v1059_v46, %v434_v57  ;;  %v446_v62 = vmax.f32 %v442_v56, 0.0  ;;  %v1396_v46 = vld [vmem:[#allocation3 + $0x8] sm:$0xff]  }
 0x1da   :  { %v449_v61 = vmax.f32 %v445_v58, 0.0 }
 0x1db   :  { %v447_v63 = vmax.f32 %v443_v59, 0.0 }
 0x1dc   :  { %v451_v0 = vpack.c.bf16 %v449_v61, %v448_v60 }
 0x1dd   :  { %v450_v1 = vpack.c.bf16 %v447_v63, %v446_v62 }
 0x1df   :  { %1235 = vmatpush3.bf16.msra.mxu1 %v450_v1 }
 0x1e0   :  { %1236 = vmatprep.subr.bf16.mxu1 %v1454_v34 }
 0x1e3   :  { %1237 = vmatpush3.bf16.msra.mxu1 %v451_v0 }
 0x1e4   :  { %1282 = vmatprep.subr.bf16.mxu1 %v1454_v34 }
 0x1e6   :  { %1239 = vmatmul.mubr.msk.bf16.vlgmr.msra.gmra.mrb[4].mxu1 %vm459_vm2, %v1370_v2 }
 0x1e7   :  { %1284 = vmatprep.mubr.msk.bf16.mxu1 %vm1455_vm1, %v1454_v34 }
 0x2b9   :  { %v497_v4 = vpop.f32.mrb[4].mxu1 }
 0x2ba   :  { %v1240_v5 = vpop.f32.mrb[5].mxu1 }
 0x2bb   :  { %v500_v6 = vpop.f32.mrb[6].mxu1 }
 0x2bc   :  { %v520_v8 = vpack.c.bf16 %v500_v6, %v497_v4  ;;  %v1241_v9 = vpop.f32.mrb[7].mxu1 }
 0x2be   :  { %1259 = vmatmul.mubr.bf16.vlgmr.msra.gmra.mrb[8].mxu0 %v520_v8 }
 0x2bf   :  { %1263 = vmatpush3.bf16.msra.mxu0 %v1379_v7  ;;  %1278 = vmatprep.mubr.msk.bf16.mxu0 %vm1455_vm1, %v1454_v34 }
 0x2c0   :  { %1264 = vmatprep.subr.bf16.mxu0 %v1454_v34 }
 0x2c3   :  { %1265 = vmatpush3.bf16.msra.mxu0 %v1380_v10 }
 0x2c4   :  { %1266 = vmatprep.subr.bf16.mxu0 %v1454_v34 }
 0x2c7   :  { %1267 = vmatpush3.bf16.msra.mxu0 %v1381_v11 }
 0x2c8   :  { %1268 = vmatprep.subr.bf16.mxu0 %v1454_v34 }
 0x2cb   :  { %1269 = vmatpush3.bf16.msra.mxu0 %v1382_v12 }
 0x2cc   :  { %1270 = vmatprep.subr.bf16.mxu0 %v1454_v34 }
 0x2cf   :  { %1271 = vmatpush3.bf16.msra.mxu0 %v1383_v13 }
 0x2d0   :  { %1272 = vmatprep.subr.bf16.mxu0 %v1454_v34 }
 0x2d3   :  { %1273 = vmatpush3.bf16.msra.mxu0 %v1384_v14 }
 0x2d4   :  { %1274 = vmatprep.subr.bf16.mxu0 %v1454_v34 }
 0x2d7   :  { %1275 = vmatpush3.bf16.msra.mxu0 %v1385_v15 }
 0x2d8   :  { %1276 = vmatprep.subr.bf16.mxu0 %v1454_v34 }
 0x2db   :  { %1277 = vmatpush3.bf16.msra.mxu0 %v1386_v16 }
 0x2de   :  { %1279 = vmatmul.mubr.bf16.vlgmr.msra.gmra.mrb[8].mxu0 %v450_v1 }
 0x3b1   :  { %v709_v18 = vpop.f32.mrb[8].mxu0 }
 0x3b2   :  { %v721_v20 = vmul.f32 %v1094_v17, %v709_v18  ;;  %v1280_v21 = vpop.f32.mrb[9].mxu0 }
 0x3b3   :  { %v712_v22 = vpop.f32.mrb[10].mxu0 }
 0x3b4   :  { %v728_v23 = vadd.f32 %v1095_v19, %v721_v20  ;;  %v722_v24 = vmul.f32 %v1094_v17, %v712_v22  ;;  %v1281_v25 = vpop.f32.mrb[11].mxu0 }
 0x3b6   :  { %v729_v26 = vadd.f32 %v1095_v19, %v722_v24  ;;  %v730_v27 = vmax.f32 %v728_v23, 0.0 }
 0x3b8   :  { %v731_v28 = vmax.f32 %v729_v26, 0.0 }
 0x3ba   :  { %v732_v29 = vpack.c.bf16 %v731_v28, %v730_v27 }
 0x3bc   :  { %1283 = vmatpush3.bf16.msra.mxu1 %v732_v29 }
 0x3bd   :  { %1288 = vmatprep.subr.bf16.mxu1 %v1454_v34 }
 0x3bf   :  { %1285 = vmatmul.mubr.msk.bf16.vlgmr.msra.gmra.mrb[8].mxu1 %vm734_vm3, %v733_v30 }
 0x3c0   :  { %1289 = vmatpush3.bf16.msra.mxu1 %v1387_v31  ;;  %1304 = vmatprep.mubr.msk.bf16.mxu1 %vm1455_vm1, %v1454_v34 }
 0x3c1   :  { %1290 = vmatprep.subr.bf16.mxu1 %v1454_v34 }
 0x3c4   :  { %1291 = vmatpush3.bf16.msra.mxu1 %v1388_v32 }
 0x3c5   :  { %1292 = vmatprep.subr.bf16.mxu1 %v1454_v34 }
 0x3c8   :  { %1293 = vmatpush3.bf16.msra.mxu1 %v1389_v33 }
 0x3c9   :  { %1294 = vmatprep.subr.bf16.mxu1 %v1454_v34 }
 0x3cc   :  { %1295 = vmatpush3.bf16.msra.mxu1 %v1390_v35 }
 0x3cd   :  { %1296 = vmatprep.subr.bf16.mxu1 %v1454_v34 }
 0x3d0   :  { %1297 = vmatpush3.bf16.msra.mxu1 %v1391_v36 }
 0x3d1   :  { %1298 = vmatprep.subr.bf16.mxu1 %v1454_v34 }
 0x3d4   :  { %1299 = vmatpush3.bf16.msra.mxu1 %v1392_v37 }
 0x3d5   :  { %1300 = vmatprep.subr.bf16.mxu1 %v1454_v34 }
 0x3d8   :  { %1301 = vmatpush3.bf16.msra.mxu1 %v1393_v38 }
 0x3d9   :  { %1302 = vmatprep.subr.bf16.mxu1 %v1454_v34 }
 0x3dc   :  { %1303 = vmatpush3.bf16.msra.mxu1 %v1394_v39 }
 0x3dd   :  { %1308 = vmatprep.subr.bf16.mxu1 %v1454_v34 }
 0x492   :  { %v772_v40 = vpop.f32.mrb[8].mxu1 }
 0x493   :  { %v794_v42 = vpack.c.bf16 %v772_v40, %v772_v40  ;;  %v1286_v43 = vpop.f32.mrb[9].mxu1 }
 0x494   :  { %v775_v44 = vpop.f32.mrb[10].mxu1 }
 0x495   :  { %1305 = vmatmul.mubr.bf16.vlgmr.msra.gmra.mrb[12].mxu1 %v794_v42  ;;  %v1287_v45 = vpop.f32.mrb[11].mxu1 }
 0x496   :  { %1309 = vmatpush3.bf16.msra.mxu1 %v1395_v41  ;;  %1324 = vmatprep.mubr.msk.bf16.mxu1 %vm1455_vm1, %v1454_v34 }
 0x497   :  { %1310 = vmatprep.subr.bf16.mxu1 %v1454_v34 }
 0x49a   :  { %1311 = vmatpush3.bf16.msra.mxu1 %v1396_v46 }
 0x49b   :  { %1312 = vmatprep.subr.bf16.mxu1 %v1454_v34 }
 0x49e   :  { %1313 = vmatpush3.bf16.msra.mxu1 %v1397_v47 }
 0x49f   :  { %1314 = vmatprep.subr.bf16.mxu1 %v1454_v34 }
 0x4a2   :  { %1315 = vmatpush3.bf16.msra.mxu1 %v1398_v48 }
 0x4a3   :  { %1316 = vmatprep.subr.bf16.mxu1 %v1454_v34 }
 0x4a6   :  { %1317 = vmatpush3.bf16.msra.mxu1 %v1399_v49 }
 0x4a7   :  { %1318 = vmatprep.subr.bf16.mxu1 %v1454_v34 }
 0x4aa   :  { %1319 = vmatpush3.bf16.msra.mxu1 %v1400_v50 }
 0x4ab   :  { %1320 = vmatprep.subr.bf16.mxu1 %v1454_v34 }
 0x4ae   :  { %1321 = vmatpush3.bf16.msra.mxu1 %v1401_v51 }
 0x4af   :  { %1322 = vmatprep.subr.bf16.mxu1 %v1454_v34 }
 0x4b2   :  { %1323 = vmatpush3.bf16.msra.mxu1 %v1402_v52 }
 0x4b5   :  { %1325 = vmatmul.mubr.bf16.vlgmr.msra.gmra.mrb[12].mxu1 %v732_v29 }
 0x588   :  { %v982_v54 = vpop.f32.mrb[12].mxu1 }
 0x589   :  { %v993_v56 = vmul.f32 %v1113_v53, %v982_v54  ;;  %v1326_v57 = vpop.f32.mrb[13].mxu1 }
 0x58a   :  { %v985_v58 = vpop.f32.mrb[14].mxu1 }
 0x58b   :  { %v999_v59 = vadd.f32 %v1114_v55, %v993_v56  ;;  %v1327_v60 = vpop.f32.mrb[15].mxu1 }
 0x58d   :  { %1000 = vst [vmem:[#allocation6] sm:$0xff] %v999_v59 }
 0x58e   :  { %1436 = shalt.err (!%p1433_p12)
}
 0x58f   :  { %s1437_s10 = scalar_lea.hbm %s1745_s11, 128 }
 0x590   :  { %p1438_p13 = scmp.ne.s32.totalorder %s1745_s11, %s1437_s10  ;;  %p1441_p0 = scmp.lt.u32.totalorder %s1437_s10, %s1745_s11 }
 0x592   :  { %p1443_p1 = pnand %p1441_p0, %p1438_p13 }
 0x594   :  { %1446 = shalt.err (!%p1443_p1)
}
 0x595   :  { %1010 = dma.vmem_to_hbm [thread:$0]  %s1008_s12, 128, %s1745_s11, [#allocation5]  }
 0x596   :  { %1449 = dma.done.wait [#allocation5], 128  }
 0x597   :  { %1450 = vsyncadd [#allocation5], 4294967168 }
 0x598   :  { %1014 = vsyncpa [#allocation4], 1 }
 0x599   :  { %1015 = vsyncpa [#allocation5], 1 }

</bundles_post_ra>
